<compile_context>
chip_gen: v5e
topology: v5e:2x2
jax: 0.10.0
libtpu: 0.0.40
codegen_flags: <defaults>
</compile_context>

<pallas_src>
import functools

import jax
import jax.numpy as jnp
from jax.experimental import pallas as pl
from jax.experimental.pallas import tpu as pltpu

LANE = 128
SUBLANE = 8


def _round_up(x, m):
    return (x + m - 1) // m * m


# ------------------------------------------------------------------
# Fused kernel: T decode steps.  Per grid step t:
#   gather pre-projected token rows -> attention -> GRU cell -> fc.
# Hidden state lives in VMEM scratch across steps.
# ------------------------------------------------------------------
def decoder_steps_kernel(
    tok_ref,      # SMEM [T, Bp] int32      (scalar prefetch)
    tbl_gi_ref,   # VMEM [Vp, Gp] f32       embed folded through W_ih(emb) + b_ih
    h0_ref,       # VMEM [Bp, H]  f32       initial decoder hidden (last layer)
    enc_ref,      # VMEM [Bp, S, Hep] f32   encoder outputs (resident)
    w_h_ref,      # VMEM [H, Hep+Gp]        merged [Wa | W_hh^T]
    w_ihc_ref,    # VMEM [Hep, Gp]          W_ih (context part), transposed
    b_hh_ref,     # VMEM [1, Gp]  f32
    w_fc_ref,     # VMEM [H, Op]
    b_fc_ref,     # VMEM [1, Op]  f32
    logits_ref,   # out  [Bp, Op] f32       (per-step block of [T, Bp, Op])
    h_out_ref,    # out  [Bp, H]  f32       (resident; holds final hidden)
    h_scr,        # VMEM scratch [Bp, H]    hidden carried across grid steps
    gi_scr,       # VMEM scratch [Bp, Gp]   gathered per-token GRU input-gate rows
):
    t = pl.program_id(0)
    bp, hdim = h0_ref.shape
    hep = enc_ref.shape[2]

    @pl.when(t == 0)
    def _():
        h_scr[...] = h0_ref[...]

    # In-kernel embedding lookup: row tok of (embed @ W_ih_emb + b_ih).
    for b in range(bp):
        tok = tok_ref[t, b]
        gi_scr[pl.ds(b, 1), :] = tbl_gi_ref[pl.ds(tok, 1), :]

    h = h_scr[...]                                    # [Bp, H] f32
    mm = w_h_ref.dtype                                # matmul operand dtype

    # One merged matmul on h: attention projection + GRU hidden gates.
    hm = jnp.dot(h.astype(mm), w_h_ref[...], preferred_element_type=jnp.float32)
    h_proj = hm[:, :hep]                              # [Bp, Hep]
    gh = hm[:, hep:] + b_hh_ref[...]                  # [Bp, Gp]

    # Luong_general attention: scores[b,s] = <enc[b,s], h @ Wa>.
    enc = enc_ref[...]                                # [Bp, S, Hep]
    scores = jnp.sum(enc * h_proj[:, None, :], axis=-1)        # [Bp, S]
    scores = scores - jnp.max(scores, axis=1, keepdims=True)
    exps = jnp.exp(scores)
    inv = pl.reciprocal(jnp.sum(exps, axis=1, keepdims=True), approx=True)
    attn = exps * inv
    context = jnp.sum(attn[:, :, None] * enc, axis=1)          # [Bp, Hep]

    # GRU input gates: folded-embedding rows (+ b_ih) + context projection.
    gi = gi_scr[...] + jnp.dot(context.astype(mm), w_ihc_ref[...],
                               preferred_element_type=jnp.float32)

    # Packed-gate slices (r, z, n occupy one 128-lane band).
    r = jax.nn.sigmoid(gi[:, 0:hdim] + gh[:, 0:hdim])
    z = jax.nn.sigmoid(gi[:, hdim:2 * hdim] + gh[:, hdim:2 * hdim])
    n = jnp.tanh(gi[:, 2 * hdim:3 * hdim] + r * gh[:, 2 * hdim:3 * hdim])
    h_new = (1.0 - z) * n + z * h                      # [Bp, H]

    h_scr[...] = h_new
    h_out_ref[...] = h_new

    # Output projection (fc).
    logits_ref[...] = (
        jnp.dot(h_new.astype(mm), w_fc_ref[...], preferred_element_type=jnp.float32)
        + b_fc_ref[...]
    )


# ------------------------------------------------------------------
# One-time parameter preparation.
# ------------------------------------------------------------------
def prepare_params(raw, *, emb_dim, hidden_size, encoder_hidden_size, output_size,
                   matmul_dtype=jnp.bfloat16):
    E, H, He, O = emb_dim, hidden_size, encoder_hidden_size, output_size
    Hep = _round_up(He, LANE)
    Gp = _round_up(3 * H, LANE)
    Op = _round_up(O, LANE)

    w_ih = raw["layer.weight_ih_l0"]   # [3H, E+He]  rows ordered (r, z, n)
    w_hh = raw["layer.weight_hh_l0"]   # [3H, H]
    b_ih = raw["layer.bias_ih_l0"]     # [3H]
    b_hh = raw["layer.bias_hh_l0"]     # [3H]
    wa = raw["attention.Wa.weight"]    # [H, He]  (nn.Linear(He, H, bias=False))
    embed = raw["embed.weight"]        # [V, E]

    # Fold embedding through the emb-part of W_ih and b_ih (exact, kept f32).
    w_ih_e = w_ih[:, :E].T                                            # [E, 3H]
    tbl_gi = jnp.dot(embed, w_ih_e, precision="highest") + b_ih[None, :]
    V = embed.shape[0]
    Vp = _round_up(V, SUBLANE)
    tbl_gi = jnp.pad(tbl_gi, ((0, Vp - V), (0, Gp - 3 * H))).astype(jnp.float32)

    # Merged h-LHS weight: [ Wa | W_hh^T ]  -> [H, Hep + Gp].
    wa_p = jnp.pad(wa, ((0, 0), (0, Hep - He)))                       # [H, Hep]
    w_hh_p = jnp.pad(w_hh.T, ((0, 0), (0, Gp - 3 * H)))               # [H, Gp]
    w_h = jnp.concatenate([wa_p, w_hh_p], axis=1).astype(matmul_dtype)

    # Context part of W_ih, transposed to [He, 3H] and padded.
    w_ih_c = jnp.pad(w_ih[:, E:E + He].T,
                     ((0, Hep - He), (0, Gp - 3 * H))).astype(matmul_dtype)
    b_hh_p = jnp.pad(b_hh, (0, Gp - 3 * H))[None, :].astype(jnp.float32)

    w_fc = jnp.pad(raw["fc.weight"].T, ((0, 0), (0, Op - O))).astype(matmul_dtype)
    b_fc = jnp.pad(raw["fc.bias"], (0, Op - O))[None, :].astype(jnp.float32)

    return dict(tbl_gi=tbl_gi, W_h=w_h, W_ih_c=w_ih_c, b_hh=b_hh_p,
                W_fc=w_fc, b_fc=b_fc)


# ------------------------------------------------------------------
# Fused multi-step decode (teacher-forced tokens).  tokens: [T, B].
# ------------------------------------------------------------------
@functools.partial(jax.jit, static_argnames=("out_size",))
def decoder_decode(tokens, hidden, encoder_outputs, params, *, out_size):
    tokens = jnp.asarray(tokens, jnp.int32)
    T, B = tokens.shape
    H = hidden.shape[-1]
    He = encoder_outputs.shape[-1]
    S = encoder_outputs.shape[1]

    Bp = _round_up(B, SUBLANE)
    Hep = params["W_ih_c"].shape[0]
    Gp = params["W_ih_c"].shape[1]
    Op = params["b_fc"].shape[1]

    tok_p = jnp.pad(tokens, ((0, 0), (0, Bp - B)))                    # pad rows -> token 0
    h0_p = jnp.pad(hidden[-1], ((0, Bp - B), (0, 0)))                 # [Bp, H]
    enc_p = jnp.pad(encoder_outputs, ((0, Bp - B), (0, 0), (0, Hep - He)))

    grid_spec = pltpu.PrefetchScalarGridSpec(
        num_scalar_prefetch=1,
        grid=(T,),
        in_specs=[
            pl.BlockSpec(params["tbl_gi"].shape, lambda t, tok: (0, 0)),
            pl.BlockSpec((Bp, H), lambda t, tok: (0, 0)),
            pl.BlockSpec((Bp, S, Hep), lambda t, tok: (0, 0, 0)),
            pl.BlockSpec(params["W_h"].shape, lambda t, tok: (0, 0)),
            pl.BlockSpec((Hep, Gp), lambda t, tok: (0, 0)),
            pl.BlockSpec((1, Gp), lambda t, tok: (0, 0)),
            pl.BlockSpec((H, Op), lambda t, tok: (0, 0)),
            pl.BlockSpec((1, Op), lambda t, tok: (0, 0)),
        ],
        out_specs=(
            pl.BlockSpec((None, Bp, Op), lambda t, tok: (t, 0, 0)),
            pl.BlockSpec((Bp, H), lambda t, tok: (0, 0)),
        ),
        scratch_shapes=[
            pltpu.VMEM((Bp, H), jnp.float32),     # hidden carry
            pltpu.VMEM((Bp, Gp), jnp.float32),    # gathered gi rows
        ],
    )

    logits_p, h_out_p = pl.pallas_call(
        decoder_steps_kernel,
        grid_spec=grid_spec,
        out_shape=(
            jax.ShapeDtypeStruct((T, Bp, Op), jnp.float32),
            jax.ShapeDtypeStruct((Bp, H), jnp.float32),
        ),
        compiler_params=pltpu.CompilerParams(dimension_semantics=("arbitrary",)),
    )(tok_p, params["tbl_gi"], h0_p, enc_p, params["W_h"], params["W_ih_c"],
      params["b_hh"], params["W_fc"], params["b_fc"])

    logits = logits_p[:, :B, :out_size]               # [T, B, O]
    new_hidden = h_out_p[:B, :][None, :, :]           # [1, B, H]
    return logits, new_hidden


def decoder_forward(tokens, hidden, encoder_outputs, params, *, out_size):
    """Single-step Decoder.forward (layer_type='gru', 1 layer, unidirectional,
    Luong_general attention).  Returns (predict_word, hidden, cell=None)."""
    logits, new_hidden = decoder_decode(tokens[None, :], hidden, encoder_outputs,
                                        params, out_size=out_size)
    return logits[0], new_hidden, None


# ------------------------------------------------------------------
# Pure-JAX reference of the PyTorch module math (high matmul precision).
# ------------------------------------------------------------------
def decoder_forward_ref(tokens, hidden, encoder_outputs, raw):
    with jax.default_matmul_precision("highest"):
        emb = raw["embed.weight"][tokens]
        h = hidden[-1]
        trans = jnp.einsum("bse,he->bsh", encoder_outputs, raw["attention.Wa.weight"])
        scores = jnp.einsum("bsh,bh->bs", trans, h)
        attn = jax.nn.softmax(scores, axis=1)
        context = jnp.einsum("bs,bse->be", attn, encoder_outputs)
        x = jnp.concatenate([emb, context], axis=1)
        gi = x @ raw["layer.weight_ih_l0"].T + raw["layer.bias_ih_l0"]
        gh = h @ raw["layer.weight_hh_l0"].T + raw["layer.bias_hh_l0"]
        H = h.shape[1]
        r = jax.nn.sigmoid(gi[:, :H] + gh[:, :H])
        z = jax.nn.sigmoid(gi[:, H:2 * H] + gh[:, H:2 * H])
        n = jnp.tanh(gi[:, 2 * H:] + r * gh[:, 2 * H:])
        h_new = (1.0 - z) * n + z * h
        logits = h_new @ raw["fc.weight"].T + raw["fc.bias"]
    return logits, h_new[None]


def decoder_decode_ref(tokens_seq, hidden, encoder_outputs, raw):
    hs = hidden
    outs = []
    for t in range(tokens_seq.shape[0]):
        logits, hs = decoder_forward_ref(tokens_seq[t], hs, encoder_outputs, raw)
        outs.append(logits)
    return jnp.stack(outs, axis=0), hs


if __name__ == "__main__":
    B = 8      # batch
    S = 16     # encoder sequence length
    T = 4      # decode steps (teacher-forced) for the fused-loop check
    V_IN = 40  # decoder input vocab (input_size)
    V_OUT = 64 # output vocab (output_size)
    E = 32     # emb_dim
    H = 32     # hidden_layers_size
    HE = 32    # encoder_hidden_size
    PAD = 0    # pad_index

    key = jax.random.PRNGKey(0)
    ks = jax.random.split(key, 12)

    def unif(k, shape, scale=0.1):
        return jax.random.uniform(k, shape, jnp.float32, -scale, scale)

    embed_tbl = unif(ks[0], (V_IN, E), 1.0).at[PAD].set(0.0)   # padding_idx row zero

    raw = {
        "embed.weight": embed_tbl,
        "attention.Wa.weight": unif(ks[1], (H, HE)),           # nn.Linear(HE, H, bias=False)
        "layer.weight_ih_l0": unif(ks[2], (3 * H, E + HE)),
        "layer.bias_ih_l0": unif(ks[3], (3 * H,)),
        "layer.weight_hh_l0": unif(ks[4], (3 * H, H)),
        "layer.bias_hh_l0": unif(ks[5], (3 * H,)),
        "fc.weight": unif(ks[6], (V_OUT, H)),
        "fc.bias": unif(ks[7], (V_OUT,)),
    }

    tokens_seq = jax.random.randint(ks[8], (T, B), 0, V_IN, dtype=jnp.int32)
    hidden = unif(ks[9], (1, B, H), 1.0)                       # [num_layers=1, B, H]
    encoder_outputs = unif(ks[10], (B, S, HE), 1.0)

    # ---- Check 1: f32 weights, single step (exact module forward semantics) ----
    params_f32 = prepare_params(raw, emb_dim=E, hidden_size=H,
                                encoder_hidden_size=HE, output_size=V_OUT,
                                matmul_dtype=jnp.float32)
    logits, new_hidden, cell = decoder_forward(tokens_seq[0], hidden, encoder_outputs,
                                               params_f32, out_size=V_OUT)
    logits = jax.block_until_ready(logits)
    new_hidden = jax.block_until_ready(new_hidden)
    assert cell is None
    assert logits.shape == (B, V_OUT) and new_hidden.shape == (1, B, H)

    ref_logits, ref_hidden = decoder_forward_ref(tokens_seq[0], hidden,
                                                 encoder_outputs, raw)
    assert jnp.allclose(logits, ref_logits, atol=5e-3, rtol=5e-3), \
        float(jnp.max(jnp.abs(logits - ref_logits)))
    assert jnp.allclose(new_hidden, ref_hidden, atol=5e-3, rtol=5e-3), \
        float(jnp.max(jnp.abs(new_hidden - ref_hidden)))

    # ---- Check 2: bf16 weights (default), fused T-step decode loop ----
    params_bf16 = prepare_params(raw, emb_dim=E, hidden_size=H,
                                 encoder_hidden_size=HE, output_size=V_OUT,
                                 matmul_dtype=jnp.bfloat16)
    logits_all, hid_T = decoder_decode(tokens_seq, hidden, encoder_outputs,
                                       params_bf16, out_size=V_OUT)
    logits_all = jax.block_until_ready(logits_all)
    hid_T = jax.block_until_ready(hid_T)
    assert logits_all.shape == (T, B, V_OUT) and hid_T.shape == (1, B, H)

    ref_logits_all, ref_hid_T = decoder_decode_ref(tokens_seq, hidden,
                                                   encoder_outputs, raw)
    assert jnp.allclose(logits_all, ref_logits_all, atol=5e-2, rtol=5e-2), \
        float(jnp.max(jnp.abs(logits_all - ref_logits_all)))
    assert jnp.allclose(hid_T, ref_hid_T, atol=5e-2, rtol=5e-2), \
        float(jnp.max(jnp.abs(hid_T - ref_hid_T)))

    print("KERNEL_OK")
</pallas_src>

<mosaic_0001>
module attributes {stable_mosaic.version = 11 : i64} {
  func.func @decoder_steps_kernel(%arg0: i32, %arg1: memref<1x8xi32, #tpu.memory_space<smem>>, %arg2: memref<40x128xf32, #tpu.memory_space<vmem>>, %arg3: memref<8x32xf32, #tpu.memory_space<vmem>>, %arg4: memref<8x16x128xf32, #tpu.memory_space<vmem>>, %arg5: memref<32x256xf32, #tpu.memory_space<vmem>>, %arg6: memref<128x128xf32, #tpu.memory_space<vmem>>, %arg7: memref<1x128xf32, #tpu.memory_space<vmem>>, %arg8: memref<32x128xf32, #tpu.memory_space<vmem>>, %arg9: memref<1x128xf32, #tpu.memory_space<vmem>>, %arg10: memref<1x8x128xf32, #tpu.memory_space<vmem>>, %arg11: memref<8x32xf32, #tpu.memory_space<vmem>>, %arg12: memref<8x32xf32, #tpu.memory_space<vmem>>, %arg13: memref<8x128xf32, #tpu.memory_space<vmem>>) attributes {dimension_semantics = [#tpu.dimension_semantics<arbitrary>], iteration_bounds = array<i64: 1>, scalar_prefetch = 1 : i64, scratch_operands = 2 : i64, tpu.core_type = #tpu.core_type<tc>, window_params = [{pipeline_mode = #tpu.pipeline_mode<synchronous>, transform_indices = @transform_0, window_bounds = array<i64: 40, 128>}, {pipeline_mode = #tpu.pipeline_mode<synchronous>, transform_indices = @transform_1, window_bounds = array<i64: 8, 32>}, {pipeline_mode = #tpu.pipeline_mode<synchronous>, transform_indices = @transform_2, window_bounds = array<i64: 8, 16, 128>}, {pipeline_mode = #tpu.pipeline_mode<synchronous>, transform_indices = @transform_3, window_bounds = array<i64: 32, 256>}, {pipeline_mode = #tpu.pipeline_mode<synchronous>, transform_indices = @transform_4, window_bounds = array<i64: 128, 128>}, {pipeline_mode = #tpu.pipeline_mode<synchronous>, transform_indices = @transform_5, window_bounds = array<i64: 1, 128>}, {pipeline_mode = #tpu.pipeline_mode<synchronous>, transform_indices = @transform_6, window_bounds = array<i64: 32, 128>}, {pipeline_mode = #tpu.pipeline_mode<synchronous>, transform_indices = @transform_7, window_bounds = array<i64: 1, 128>}, {transform_indices = @transform_8, window_bounds = array<i64: 1, 8, 128>}, {pipeline_mode = #tpu.pipeline_mode<synchronous>, transform_indices = @transform_9, window_bounds = array<i64: 8, 32>}]} {
    %c0_i32 = arith.constant 0 : i32
    %0 = arith.cmpi eq, %arg0, %c0_i32 : i32
    %1 = arith.extui %0 : i1 to i32
    %c0_i32_0 = arith.constant 0 : i32
    %2 = arith.cmpi ne, %1, %c0_i32_0 : i32
    scf.if %2 {
      %c0_58 = arith.constant 0 : index
      %c0_59 = arith.constant 0 : index
      %110 = vector.load %arg3[%c0_58, %c0_59] : memref<8x32xf32, #tpu.memory_space<vmem>>, vector<8x32xf32>
      %c0_60 = arith.constant 0 : index
      %c0_61 = arith.constant 0 : index
      %111 = vector.load %arg12[%c0_60, %c0_61] : memref<8x32xf32, #tpu.memory_space<vmem>>, vector<8x32xf32>
      tpu.vector_store %arg12[%c0_60, %c0_61], %110 {strides = array<i32>} : memref<8x32xf32, #tpu.memory_space<vmem>>, vector<8x32xf32>,
    } else {
    }
    %3 = arith.index_cast %arg0 : i32 to index
    %c0 = arith.constant 0 : index
    %4 = memref.load %arg1[%3, %c0] : memref<1x8xi32, #tpu.memory_space<smem>>
    %5 = arith.index_cast %4 : i32 to index
    %c0_1 = arith.constant 0 : index
    %6 = vector.load %arg2[%5, %c0_1] : memref<40x128xf32, #tpu.memory_space<vmem>>, vector<1x128xf32>
    %c0_2 = arith.constant 0 : index
    %c0_3 = arith.constant 0 : index
    %7 = vector.load %arg13[%c0_2, %c0_3] : memref<8x128xf32, #tpu.memory_space<vmem>>, vector<1x128xf32>
    tpu.vector_store %arg13[%c0_2, %c0_3], %6 {strides = array<i32>} : memref<8x128xf32, #tpu.memory_space<vmem>>, vector<1x128xf32>,
    %8 = arith.index_cast %arg0 : i32 to index
    %c1 = arith.constant 1 : index
    %9 = memref.load %arg1[%8, %c1] : memref<1x8xi32, #tpu.memory_space<smem>>
    %10 = arith.index_cast %9 : i32 to index
    %c0_4 = arith.constant 0 : index
    %11 = vector.load %arg2[%10, %c0_4] : memref<40x128xf32, #tpu.memory_space<vmem>>, vector<1x128xf32>
    %c1_5 = arith.constant 1 : index
    %c0_6 = arith.constant 0 : index
    %12 = vector.load %arg13[%c1_5, %c0_6] : memref<8x128xf32, #tpu.memory_space<vmem>>, vector<1x128xf32>
    tpu.vector_store %arg13[%c1_5, %c0_6], %11 {strides = array<i32>} : memref<8x128xf32, #tpu.memory_space<vmem>>, vector<1x128xf32>,
    %13 = arith.index_cast %arg0 : i32 to index
    %c2 = arith.constant 2 : index
    %14 = memref.load %arg1[%13, %c2] : memref<1x8xi32, #tpu.memory_space<smem>>
    %15 = arith.index_cast %14 : i32 to index
    %c0_7 = arith.constant 0 : index
    %16 = vector.load %arg2[%15, %c0_7] : memref<40x128xf32, #tpu.memory_space<vmem>>, vector<1x128xf32>
    %c2_8 = arith.constant 2 : index
    %c0_9 = arith.constant 0 : index
    %17 = vector.load %arg13[%c2_8, %c0_9] : memref<8x128xf32, #tpu.memory_space<vmem>>, vector<1x128xf32>
    tpu.vector_store %arg13[%c2_8, %c0_9], %16 {strides = array<i32>} : memref<8x128xf32, #tpu.memory_space<vmem>>, vector<1x128xf32>,
    %18 = arith.index_cast %arg0 : i32 to index
    %c3 = arith.constant 3 : index
    %19 = memref.load %arg1[%18, %c3] : memref<1x8xi32, #tpu.memory_space<smem>>
    %20 = arith.index_cast %19 : i32 to index
    %c0_10 = arith.constant 0 : index
    %21 = vector.load %arg2[%20, %c0_10] : memref<40x128xf32, #tpu.memory_space<vmem>>, vector<1x128xf32>
    %c3_11 = arith.constant 3 : index
    %c0_12 = arith.constant 0 : index
    %22 = vector.load %arg13[%c3_11, %c0_12] : memref<8x128xf32, #tpu.memory_space<vmem>>, vector<1x128xf32>
    tpu.vector_store %arg13[%c3_11, %c0_12], %21 {strides = array<i32>} : memref<8x128xf32, #tpu.memory_space<vmem>>, vector<1x128xf32>,
    %23 = arith.index_cast %arg0 : i32 to index
    %c4 = arith.constant 4 : index
    %24 = memref.load %arg1[%23, %c4] : memref<1x8xi32, #tpu.memory_space<smem>>
    %25 = arith.index_cast %24 : i32 to index
    %c0_13 = arith.constant 0 : index
    %26 = vector.load %arg2[%25, %c0_13] : memref<40x128xf32, #tpu.memory_space<vmem>>, vector<1x128xf32>
    %c4_14 = arith.constant 4 : index
    %c0_15 = arith.constant 0 : index
    %27 = vector.load %arg13[%c4_14, %c0_15] : memref<8x128xf32, #tpu.memory_space<vmem>>, vector<1x128xf32>
    tpu.vector_store %arg13[%c4_14, %c0_15], %26 {strides = array<i32>} : memref<8x128xf32, #tpu.memory_space<vmem>>, vector<1x128xf32>,
    %28 = arith.index_cast %arg0 : i32 to index
    %c5 = arith.constant 5 : index
    %29 = memref.load %arg1[%28, %c5] : memref<1x8xi32, #tpu.memory_space<smem>>
    %30 = arith.index_cast %29 : i32 to index
    %c0_16 = arith.constant 0 : index
    %31 = vector.load %arg2[%30, %c0_16] : memref<40x128xf32, #tpu.memory_space<vmem>>, vector<1x128xf32>
    %c5_17 = arith.constant 5 : index
    %c0_18 = arith.constant 0 : index
    %32 = vector.load %arg13[%c5_17, %c0_18] : memref<8x128xf32, #tpu.memory_space<vmem>>, vector<1x128xf32>
    tpu.vector_store %arg13[%c5_17, %c0_18], %31 {strides = array<i32>} : memref<8x128xf32, #tpu.memory_space<vmem>>, vector<1x128xf32>,
    %33 = arith.index_cast %arg0 : i32 to index
    %c6 = arith.constant 6 : index
    %34 = memref.load %arg1[%33, %c6] : memref<1x8xi32, #tpu.memory_space<smem>>
    %35 = arith.index_cast %34 : i32 to index
    %c0_19 = arith.constant 0 : index
    %36 = vector.load %arg2[%35, %c0_19] : memref<40x128xf32, #tpu.memory_space<vmem>>, vector<1x128xf32>
    %c6_20 = arith.constant 6 : index
    %c0_21 = arith.constant 0 : index
    %37 = vector.load %arg13[%c6_20, %c0_21] : memref<8x128xf32, #tpu.memory_space<vmem>>, vector<1x128xf32>
    tpu.vector_store %arg13[%c6_20, %c0_21], %36 {strides = array<i32>} : memref<8x128xf32, #tpu.memory_space<vmem>>, vector<1x128xf32>,
    %38 = arith.index_cast %arg0 : i32 to index
    %c7 = arith.constant 7 : index
    %39 = memref.load %arg1[%38, %c7] : memref<1x8xi32, #tpu.memory_space<smem>>
    %40 = arith.index_cast %39 : i32 to index
    %c0_22 = arith.constant 0 : index
    %41 = vector.load %arg2[%40, %c0_22] : memref<40x128xf32, #tpu.memory_space<vmem>>, vector<1x128xf32>
    %c7_23 = arith.constant 7 : index
    %c0_24 = arith.constant 0 : index
    %42 = vector.load %arg13[%c7_23, %c0_24] : memref<8x128xf32, #tpu.memory_space<vmem>>, vector<1x128xf32>
    tpu.vector_store %arg13[%c7_23, %c0_24], %41 {strides = array<i32>} : memref<8x128xf32, #tpu.memory_space<vmem>>, vector<1x128xf32>,
    %c0_25 = arith.constant 0 : index
    %c0_26 = arith.constant 0 : index
    %43 = vector.load %arg12[%c0_25, %c0_26] : memref<8x32xf32, #tpu.memory_space<vmem>>, vector<8x32xf32>
    %c0_27 = arith.constant 0 : index
    %c0_28 = arith.constant 0 : index
    %44 = vector.load %arg5[%c0_27, %c0_28] : memref<32x256xf32, #tpu.memory_space<vmem>>, vector<32x256xf32>
    %cst = arith.constant dense<0.000000e+00> : vector<8x256xf32>
    %45 = tpu.matmul %43, %44, %cst {dimension_numbers = #tpu.dot_dimension_numbers<[1], [0], [0], [1], [0, 0, 1, 1], [], []>} : vector<8x32xf32>, vector<32x256xf32>, vector<8x256xf32> -> vector<8x256xf32>
    %46 = vector.extract_strided_slice %45 {offsets = [0, 0], sizes = [8, 128], strides = [1, 1]} : vector<8x256xf32> to vector<8x128xf32>
    %47 = vector.extract_strided_slice %45 {offsets = [0, 128], sizes = [8, 128], strides = [1, 1]} : vector<8x256xf32> to vector<8x128xf32>
    %c0_29 = arith.constant 0 : index
    %c0_30 = arith.constant 0 : index
    %48 = vector.load %arg7[%c0_29, %c0_30] : memref<1x128xf32, #tpu.memory_space<vmem>>, vector<1x128xf32>
    %49 = vector.broadcast %48 : vector<1x128xf32> to vector<8x128xf32>
    %50 = arith.addf %47, %49 : vector<8x128xf32>
    %c0_31 = arith.constant 0 : index
    %c0_32 = arith.constant 0 : index
    %c0_33 = arith.constant 0 : index
    %51 = vector.load %arg4[%c0_31, %c0_32, %c0_33] : memref<8x16x128xf32, #tpu.memory_space<vmem>>, vector<8x16x128xf32>
    %52 = vector.shape_cast %46 : vector<8x128xf32> to vector<8x1x128xf32>
    %53 = vector.broadcast %52 : vector<8x1x128xf32> to vector<8x16x128xf32>
    %54 = arith.mulf %51, %53 : vector<8x16x128xf32>
    %cst_34 = arith.constant dense<0.000000e+00> : vector<8x16xf32>
    %55 = vector.multi_reduction <add>, %54, %cst_34 [2] : vector<8x16x128xf32> to vector<8x16xf32>
    %cst_35 = arith.constant dense<0xFF800000> : vector<8xf32>
    %56 = vector.multi_reduction <maximumf>, %55, %cst_35 [1] : vector<8x16xf32> to vector<8xf32>
    %57 = vector.shape_cast %56 : vector<8xf32> to vector<8x1xf32>
    %58 = vector.broadcast %57 : vector<8x1xf32> to vector<8x16xf32>
    %59 = arith.subf %55, %58 : vector<8x16xf32>
    %60 = math.exp %59 : vector<8x16xf32>
    %cst_36 = arith.constant dense<0.000000e+00> : vector<8xf32>
    %61 = vector.multi_reduction <add>, %60, %cst_36 [1] : vector<8x16xf32> to vector<8xf32>
    %62 = vector.shape_cast %61 : vector<8xf32> to vector<8x1xf32>
    %63 = tpu.reciprocal %62 {approx = true} : vector<8x1xf32> -> vector<8x1xf32>
    %64 = vector.broadcast %63 : vector<8x1xf32> to vector<8x16xf32>
    %65 = arith.mulf %60, %64 : vector<8x16xf32>
    %66 = vector.shape_cast %65 : vector<8x16xf32> to vector<8x16x1xf32>
    %67 = vector.broadcast %66 : vector<8x16x1xf32> to vector<8x16x128xf32>
    %68 = arith.mulf %67, %51 : vector<8x16x128xf32>
    %cst_37 = arith.constant dense<0.000000e+00> : vector<8x128xf32>
    %69 = vector.multi_reduction <add>, %68, %cst_37 [1] : vector<8x16x128xf32> to vector<8x128xf32>
    %c0_38 = arith.constant 0 : index
    %c0_39 = arith.constant 0 : index
    %70 = vector.load %arg13[%c0_38, %c0_39] : memref<8x128xf32, #tpu.memory_space<vmem>>, vector<8x128xf32>
    %c0_40 = arith.constant 0 : index
    %c0_41 = arith.constant 0 : index
    %71 = vector.load %arg6[%c0_40, %c0_41] : memref<128x128xf32, #tpu.memory_space<vmem>>, vector<128x128xf32>
    %cst_42 = arith.constant dense<0.000000e+00> : vector<8x128xf32>
    %72 = tpu.matmul %69, %71, %cst_42 {dimension_numbers = #tpu.dot_dimension_numbers<[1], [0], [0], [1], [0, 0, 1, 1], [], []>} : vector<8x128xf32>, vector<128x128xf32>, vector<8x128xf32> -> vector<8x128xf32>
    %73 = arith.addf %70, %72 : vector<8x128xf32>
    %74 = vector.extract_strided_slice %73 {offsets = [0, 0], sizes = [8, 32], strides = [1, 1]} : vector<8x128xf32> to vector<8x32xf32>
    %75 = vector.extract_strided_slice %50 {offsets = [0, 0], sizes = [8, 32], strides = [1, 1]} : vector<8x128xf32> to vector<8x32xf32>
    %76 = arith.addf %74, %75 : vector<8x32xf32>
    %77 = arith.negf %76 : vector<8x32xf32>
    %78 = math.exp %77 : vector<8x32xf32>
    %cst_43 = arith.constant 1.000000e+00 : f32
    %79 = vector.broadcast %cst_43 : f32 to vector<8x32xf32>
    %80 = arith.addf %79, %78 : vector<8x32xf32>
    %81 = arith.divf %79, %80 : vector<8x32xf32>
    %82 = vector.extract_strided_slice %73 {offsets = [0, 32], sizes = [8, 32], strides = [1, 1]} : vector<8x128xf32> to vector<8x32xf32>
    %83 = vector.extract_strided_slice %50 {offsets = [0, 32], sizes = [8, 32], strides = [1, 1]} : vector<8x128xf32> to vector<8x32xf32>
    %84 = arith.addf %82, %83 : vector<8x32xf32>
    %85 = arith.negf %84 : vector<8x32xf32>
    %86 = math.exp %85 : vector<8x32xf32>
    %cst_44 = arith.constant 1.000000e+00 : f32
    %87 = vector.broadcast %cst_44 : f32 to vector<8x32xf32>
    %88 = arith.addf %87, %86 : vector<8x32xf32>
    %89 = arith.divf %87, %88 : vector<8x32xf32>
    %90 = vector.extract_strided_slice %73 {offsets = [0, 64], sizes = [8, 32], strides = [1, 1]} : vector<8x128xf32> to vector<8x32xf32>
    %91 = vector.extract_strided_slice %50 {offsets = [0, 64], sizes = [8, 32], strides = [1, 1]} : vector<8x128xf32> to vector<8x32xf32>
    %92 = arith.mulf %81, %91 : vector<8x32xf32>
    %93 = arith.addf %90, %92 : vector<8x32xf32>
    %94 = math.tanh %93 : vector<8x32xf32>
    %cst_45 = arith.constant 1.000000e+00 : f32
    %95 = vector.broadcast %cst_45 : f32 to vector<8x32xf32>
    %96 = arith.subf %95, %89 : vector<8x32xf32>
    %97 = arith.mulf %96, %94 : vector<8x32xf32>
    %98 = arith.mulf %89, %43 : vector<8x32xf32>
    %99 = arith.addf %97, %98 : vector<8x32xf32>
    %c0_46 = arith.constant 0 : index
    %c0_47 = arith.constant 0 : index
    %100 = vector.load %arg12[%c0_46, %c0_47] : memref<8x32xf32, #tpu.memory_space<vmem>>, vector<8x32xf32>
    tpu.vector_store %arg12[%c0_46, %c0_47], %99 {strides = array<i32>} : memref<8x32xf32, #tpu.memory_space<vmem>>, vector<8x32xf32>,
    %c0_48 = arith.constant 0 : index
    %c0_49 = arith.constant 0 : index
    %101 = vector.load %arg11[%c0_48, %c0_49] : memref<8x32xf32, #tpu.memory_space<vmem>>, vector<8x32xf32>
    tpu.vector_store %arg11[%c0_48, %c0_49], %99 {strides = array<i32>} : memref<8x32xf32, #tpu.memory_space<vmem>>, vector<8x32xf32>,
    %c0_50 = arith.constant 0 : index
    %c0_51 = arith.constant 0 : index
    %102 = vector.load %arg8[%c0_50, %c0_51] : memref<32x128xf32, #tpu.memory_space<vmem>>, vector<32x128xf32>
    %cst_52 = arith.constant dense<0.000000e+00> : vector<8x128xf32>
    %103 = tpu.matmul %99, %102, %cst_52 {dimension_numbers = #tpu.dot_dimension_numbers<[1], [0], [0], [1], [0, 0, 1, 1], [], []>} : vector<8x32xf32>, vector<32x128xf32>, vector<8x128xf32> -> vector<8x128xf32>
    %c0_53 = arith.constant 0 : index
    %c0_54 = arith.constant 0 : index
    %104 = vector.load %arg9[%c0_53, %c0_54] : memref<1x128xf32, #tpu.memory_space<vmem>>, vector<1x128xf32>
    %105 = vector.broadcast %104 : vector<1x128xf32> to vector<8x128xf32>
    %106 = arith.addf %103, %105 : vector<8x128xf32>
    %c0_55 = arith.constant 0 : index
    %c0_56 = arith.constant 0 : index
    %c0_57 = arith.constant 0 : index
    %107 = vector.load %arg10[%c0_55, %c0_56, %c0_57] : memref<1x8x128xf32, #tpu.memory_space<vmem>>, vector<1x8x128xf32>
    %108 = vector.shape_cast %107 : vector<1x8x128xf32> to vector<8x128xf32>
    %109 = vector.shape_cast %106 : vector<8x128xf32> to vector<1x8x128xf32>
    tpu.vector_store %arg10[%c0_55, %c0_56, %c0_57], %109 {strides = array<i32>} : memref<1x8x128xf32, #tpu.memory_space<vmem>>, vector<1x8x128xf32>,
    return
  }
  func.func @transform_0(%arg0: i32, %arg1: memref<1x8xi32, #tpu.memory_space<smem>>) -> (i32, i32) {
    %c0_i32 = arith.constant 0 : i32
    %c0_i32_0 = arith.constant 0 : i32
    %c0_i32_1 = arith.constant 0 : i32
    return %c0_i32, %c0_i32_0 : i32, i32
  }
  func.func @transform_1(%arg0: i32, %arg1: memref<1x8xi32, #tpu.memory_space<smem>>) -> (i32, i32) {
    %c0_i32 = arith.constant 0 : i32
    %c0_i32_0 = arith.constant 0 : i32
    %c0_i32_1 = arith.constant 0 : i32
    return %c0_i32, %c0_i32_0 : i32, i32
  }
  func.func @transform_2(%arg0: i32, %arg1: memref<1x8xi32, #tpu.memory_space<smem>>) -> (i32, i32, i32) {
    %c0_i32 = arith.constant 0 : i32
    %c0_i32_0 = arith.constant 0 : i32
    %c0_i32_1 = arith.constant 0 : i32
    %c0_i32_2 = arith.constant 0 : i32
    return %c0_i32, %c0_i32_0, %c0_i32_1 : i32, i32, i32
  }
  func.func @transform_3(%arg0: i32, %arg1: memref<1x8xi32, #tpu.memory_space<smem>>) -> (i32, i32) {
    %c0_i32 = arith.constant 0 : i32
    %c0_i32_0 = arith.constant 0 : i32
    %c0_i32_1 = arith.constant 0 : i32
    return %c0_i32, %c0_i32_0 : i32, i32
  }
  func.func @transform_4(%arg0: i32, %arg1: memref<1x8xi32, #tpu.memory_space<smem>>) -> (i32, i32) {
    %c0_i32 = arith.constant 0 : i32
    %c0_i32_0 = arith.constant 0 : i32
    %c0_i32_1 = arith.constant 0 : i32
    return %c0_i32, %c0_i32_0 : i32, i32
  }
  func.func @transform_5(%arg0: i32, %arg1: memref<1x8xi32, #tpu.memory_space<smem>>) -> (i32, i32) {
    %c0_i32 = arith.constant 0 : i32
    %c0_i32_0 = arith.constant 0 : i32
    %c0_i32_1 = arith.constant 0 : i32
    return %c0_i32, %c0_i32_0 : i32, i32
  }
  func.func @transform_6(%arg0: i32, %arg1: memref<1x8xi32, #tpu.memory_space<smem>>) -> (i32, i32) {
    %c0_i32 = arith.constant 0 : i32
    %c0_i32_0 = arith.constant 0 : i32
    %c0_i32_1 = arith.constant 0 : i32
    return %c0_i32, %c0_i32_0 : i32, i32
  }
  func.func @transform_7(%arg0: i32, %arg1: memref<1x8xi32, #tpu.memory_space<smem>>) -> (i32, i32) {
    %c0_i32 = arith.constant 0 : i32
    %c0_i32_0 = arith.constant 0 : i32
    %c0_i32_1 = arith.constant 0 : i32
    return %c0_i32, %c0_i32_0 : i32, i32
  }
  func.func @transform_8(%arg0: i32, %arg1: memref<1x8xi32, #tpu.memory_space<smem>>) -> (i32, i32, i32) {
    %c0_i32 = arith.constant 0 : i32
    %c0_i32_0 = arith.constant 0 : i32
    %c0_i32_1 = arith.constant 0 : i32
    return %arg0, %c0_i32, %c0_i32_0 : i32, i32, i32
  }
  func.func @transform_9(%arg0: i32, %arg1: memref<1x8xi32, #tpu.memory_space<smem>>) -> (i32, i32) {
    %c0_i32 = arith.constant 0 : i32
    %c0_i32_0 = arith.constant 0 : i32
    %c0_i32_1 = arith.constant 0 : i32
    return %c0_i32, %c0_i32_0 : i32, i32
  }
}

</mosaic_0001>

<bundles_post_ra>
// kernel: decoder_decode.1
= control target key start
LH: loop header
LB: loop body
LE: loop exit
PB: predicated region body
PF: predicated region fallthrough
CT: control target
= control target key end

     0   :  { %s996_s16 = smov [#allocation5]   ;;  %s1515_s0 = inlined_call_operand.vmem [shape: s32[1,8], index: 0, kind: input, shape index: {}]   ;;  %s1516_s1 = inlined_call_operand.vmem [shape: f32[40,128], index: 1, kind: input, shape index: {}]   ;;  %s1517_s2 = inlined_call_operand.vmem [shape: f32[8,32], index: 2, kind: input, shape index: {}]   ;;  %s1518_s3 = inlined_call_operand.vmem [shape: f32[8,16,128], index: 3, kind: input, shape index: {}]   ;;  %s1519_s4 = inlined_call_operand.vmem [shape: f32[32,256], index: 4, kind: input, shape index: {}]   ;;  %s1520_s5 = inlined_call_operand.vmem [shape: f32[128,128], index: 5, kind: input, shape index: {}]   ;;  %s1521_s6 = inlined_call_operand.vmem [shape: f32[1,128], index: 6, kind: input, shape index: {}]   ;;  %s1522_s7 = inlined_call_operand.hbm [shape: f32[32,128], index: 7, kind: input, shape index: {}]   ;;  %s1523_s8 = inlined_call_operand.vmem [shape: f32[1,128], index: 8, kind: input, shape index: {}]   ;;  %s1524_s9 = inlined_call_operand.hbm [shape: f32[1,8,128], index: 9, kind: output, shape index: {0}]   ;;  %s1525_s10 = inlined_call_operand.hbm [shape: f32[8,32], index: 10, kind: output, shape index: {1}]  }
   0x1   :  { %s17_s15 = sshll.u32 %s1515_s0, 4  ;;  %s18_s15 = int_to_ptr.vmem [resolvable:$true] %s17_s15 }
   0x2   :  { %20 = dma.vmem_to_smem %s18_s15, 16, %s996_s16, [#allocation4] }
   0x3   :  { %988 = dma.done.wait [#allocation4], 16 }
   0x4   :  { %989 = vsyncadd [#allocation4], 4294967280 }
   0x5   :  { %23 = sfence }
   0x6   :  { %24 = vsyncpa [#allocation7], 0 }
   0x7   :  { %25 = vsyncpa [#allocation8], 0 }
   0x8   :  { %26 = vsyncpa [#allocation11], 0  ;;  %s43_s19 = sshll.u32 %s1522_s7, 4  ;;  %s997_s20 = smov [#allocation6]   ;;  %s44_s19 = int_to_ptr.hbm [resolvable:$true] %s43_s19 }
   0x9   :  { %s45_s21 = sshll.u32 %s997_s20, 4  ;;  %s998_s22 = smov 128   ;;  %s46_s21 = int_to_ptr.vmem [resolvable:$true] %s45_s21 }
   0xa   :  { %s999_s23 = smov 8  }
   0xb   :  { %51 = dma.hbm_to_vmem [thread:$0]  %s44_s19, 512, %s46_s21, [#allocation7], %s998_s22, %s998_s22, %s999_s23  }
   0xc   :  { %990 = dma.done.wait [#allocation7], 512  }
   0xd   :  { %991 = vsyncadd [#allocation7], 4294966784  ;;  %vm63_vm0 = vcmask 261120   ;;  %v112_v0 = vld [vmem:[%s1519_s4 + $0x30] sm:$0xff]  ;;  %v110_v1 = vld [vmem:[%s1519_s4 + $0x20] sm:$0xff]  ;;  %v267_v63 = vlaneseq  ;;  %vm272_vm1 = vcmask 130112  }
   0xe   :  { %130 = vmatpush.msra.mxu0 %v112_v0  ;;  %v62_v2 = vld [vmem:[%s1517_s2] sm:$0xff]  ;;  %v108_v3 = vld [vmem:[%s1519_s4 + $0x10] sm:$0xff]  ;;  %v1108_v18 = vld [vmem:[%s1518_s3 + $0x8] sm:$0xff]  ;;  %vm295_vm2 = vcmask 1041409   ;;  %vm297_vm3 = vcmask 1042434   ;;  %vm299_vm4 = vcmask 1043459  }
   0xf   :  { %64 = vst.msk [vmem:[#allocation2] sm:$0xff] %vm63_vm0, %v62_v2  ;;  %v106_v4 = vld [vmem:[%s1519_s4] sm:$0xff]  ;;  %v1100_v12 = vld [vmem:[%s1518_s3 + $0x10] sm:$0xff]  ;;  %v1113_v19 = vld [vmem:[%s1518_s3 + $0x28] sm:$0xff]  ;;  %v1201_v0 = vand.u32 127, %v267_v63  ;;  %vm301_vm5 = vcmask 1044484  }
  0x10   :  { %131 = vmatpush.msra.mxu0 %v110_v1  ;;  %v1090_v7 = vld [vmem:[%s1518_s3] sm:$0xff]  ;;  %v1118_v20 = vld [vmem:[%s1518_s3 + $0x18] sm:$0xff]  ;;  %v1126_v27 = vld [vmem:[%s1518_s3 + $0x30] sm:$0xff]  ;;  %vm303_vm6 = vcmask 1045509   ;;  %vm305_vm7 = vcmask 1046534   ;;  %vm307_vm8 = vcmask 1047559  }
  0x11   :  { %v1095_v11 = vld [vmem:[%s1518_s3 + $0x20] sm:$0xff]  ;;  %v1136_v30 = vld [vmem:[%s1518_s3 + $0x38] sm:$0xff]  ;;  %v1144_v35 = vld [vmem:[%s1518_s3 + $0x48] sm:$0xff]  ;;  %v1206_v2 = vadd.s32 4294967288, %v1201_v0  ;;  %vm310_vm9 = vcmask 130048   ;;  %s838_s11 = sld [smem:[#allocation5 + $0x1]] }
  0x12   :  { %132 = vmatpush.msra.mxu0 %v108_v3  ;;  %v1131_v29 = vld [vmem:[%s1518_s3 + $0x40] sm:$0xff]  ;;  %v1149_v37 = vld [vmem:[%s1518_s3 + $0x58] sm:$0xff]  ;;  %v1154_v38 = vld [vmem:[%s1518_s3 + $0x50] sm:$0xff]  ;;  %s839_s2 = sld [smem:[#allocation5 + $0x2]]  ;;  %s804_s7 = sshll.u32 %s1524_s9, 4  ;;  %s805_s7 = int_to_ptr.hbm [resolvable:$true] %s804_s7 }
  0x13   :  { %v1162_v45 = vld [vmem:[%s1518_s3 + $0x60] sm:$0xff]  ;;  %v1167_v47 = vld [vmem:[%s1518_s3 + $0x70] sm:$0xff]  ;;  %v1172_v48 = vld [vmem:[%s1518_s3 + $0x68] sm:$0xff]  ;;  %s840_s12 = sld [smem:[#allocation5 + $0x3]] }
  0x14   :  { %133 = vmatpush.msra.mxu0 %v106_v4  ;;  %v1180_v52 = vld [vmem:[%s1518_s3 + $0x78] sm:$0xff]  ;;  %s841_s13 = sld [smem:[#allocation5 + $0x4]] }
  0x15   :  { %s842_s14 = sld [smem:[#allocation5 + $0x5]] }
  0x16   :  { %v1083_v5 = vld [vmem:[#allocation2] sm:$0xff]  ;;  %s843_s15 = sld [smem:[#allocation5 + $0x6]] }
  0x17   :  { %845 = vmatmul.msk.f32.vlgmr.msra.gmra.mxu0 %vm63_vm0, %v1083_v5  ;;  %s844_s16 = sld [smem:[#allocation5 + $0x7]]  ;;  %s72_s21 = scalar_lea.vmem %s1516_s1, %s838_s11 }
  0x18   :  { %s77_s0 = scalar_lea.vmem %s1516_s1, %s839_s2 }
  0x19   :  { %s82_s26 = scalar_lea.vmem %s1516_s1, %s840_s12 }
  0x1a   :  { %s87_s28 = scalar_lea.vmem %s1516_s1, %s841_s13 }
  0x1b   :  { %s92_s30 = scalar_lea.vmem %s1516_s1, %s842_s14 }
  0x1c   :  { %s97_s2 = scalar_lea.vmem %s1516_s1, %s843_s15  ;;  %s1001_s15 = smov 64  }
  0x1d   :  { %s102_s18 = scalar_lea.vmem %s1516_s1, %s844_s16 }
  0x94   :  { %v135_v6 = vpop.f32.mrf.mxu0 }
  0x95   :  { %v187_v8 = vperm.slane %v135_v6, 0  ;;  %v181_v9 = vrot.slane %v135_v6, 2  ;;  %v180_v10 = vrot.slane %v135_v6, 1  ;;  %v182_v22 = vrot.slane %v135_v6, 3 }
  0x96   :  { %v183_v25 = vrot.slane %v135_v6, 4  ;;  %v184_v34 = vrot.slane %v135_v6, 5  ;;  %v185_v40 = vrot.slane %v135_v6, 6  ;;  %v186_v43 = vrot.slane %v135_v6, 7 }
  0x97   :  { %v203_v13 = vmul.f32 %v187_v8, %v1090_v7  ;;  %v189_v14 = vperm.slane %v181_v9, 0  ;;  %v188_v15 = vperm.slane %v180_v10, 0  ;;  %v204_v21 = vmul.f32 %v187_v8, %v1108_v18 }
  0x98   :  { %v190_v26 = vperm.slane %v182_v22, 0  ;;  %v191_v28 = vperm.slane %v183_v25, 0  ;;  %v192_v36 = vperm.slane %v184_v34, 0  ;;  %v193_v44 = vperm.slane %v185_v40, 0 }
  0x99   :  { %219 = vadd.xlane.f32.xlu0 %v203_v13  ;;  %v207_v16 = vmul.f32 %v189_v14, %v1095_v11  ;;  %v205_v17 = vmul.f32 %v188_v15, %v1100_v12  ;;  %v208_v23 = vmul.f32 %v189_v14, %v1113_v19  ;;  %v206_v24 = vmul.f32 %v188_v15, %v1118_v20 }
  0x9a   :  { %v209_v31 = vmul.f32 %v190_v26, %v1126_v27  ;;  %v211_v32 = vmul.f32 %v191_v28, %v1131_v29  ;;  %v210_v33 = vmul.f32 %v190_v26, %v1136_v30  ;;  %v212_v39 = vmul.f32 %v191_v28, %v1144_v35 }
  0x9b   :  { %227 = vadd.xlane.f32.xlu2 %v207_v16  ;;  %223 = vadd.xlane.f32.xlu1 %v205_v17  ;;  %v214_v41 = vmul.f32 %v192_v36, %v1149_v37  ;;  %v213_v42 = vmul.f32 %v192_v36, %v1154_v38  ;;  %v194_v46 = vperm.slane %v186_v43, 0  ;;  %v215_v49 = vmul.f32 %v193_v44, %v1162_v45 }
  0x9c   :  { %v216_v51 = vmul.f32 %v193_v44, %v1172_v48 }
  0x9d   :  { %v217_v50 = vmul.f32 %v194_v46, %v1167_v47  ;;  %v218_v53 = vmul.f32 %v194_v46, %v1180_v52 }
  0xa1   :  { %221 = vadd.xlane.f32.xlu0 %v204_v21 }
  0xa3   :  { %229 = vadd.xlane.f32.xlu2 %v208_v23  ;;  %225 = vadd.xlane.f32.xlu1 %v206_v24 }
  0xa9   :  { %231 = vadd.xlane.f32.xlu0 %v209_v31 }
  0xab   :  { %235 = vadd.xlane.f32.xlu2 %v211_v32  ;;  %233 = vadd.xlane.f32.xlu1 %v210_v33 }
  0xb1   :  { %237 = vadd.xlane.f32.xlu0 %v212_v39 }
  0xb3   :  { %241 = vadd.xlane.f32.xlu2 %v214_v41  ;;  %239 = vadd.xlane.f32.xlu1 %v213_v42 }
  0xb9   :  { %243 = vadd.xlane.f32.xlu0 %v215_v49 }
  0xbb   :  { %247 = vadd.xlane.f32.xlu2 %v217_v50  ;;  %245 = vadd.xlane.f32.xlu1 %v216_v51 }
  0xc1   :  { %249 = vadd.xlane.f32.xlu0 %v218_v53 }
 0x10c   :  { %v1183_v54 = vpop.xlane.xlu0 %219 }
 0x10d   :  { %v269_v13 = vperm.slane %v1183_v54, %v1201_v0 }
 0x10e   :  { %v1185_v55 = vpop.xlane.xlu2 %227  ;;  %v1187_v56 = vpop.xlane.xlu1 %223 }
 0x10f   :  { %v274_v8 = vperm.slane %v1187_v56, %v1201_v0  ;;  %v277_v16 = vperm.slane %v1185_v55, %v1201_v0 }
 0x114   :  { %v1189_v57 = vpop.xlane.xlu0 %221 }
 0x115   :  { %v271_v9 = vperm.slane %v1189_v57, %v1206_v2 }
 0x116   :  { %v1191_v58 = vpop.xlane.xlu2 %229  ;;  %v1193_v59 = vpop.xlane.xlu1 %225 }
 0x117   :  { %v275_v4 = vperm.slane %v1193_v59, %v1206_v2  ;;  %v278_v10 = vperm.slane %v1191_v58, %v1206_v2  ;;  %v273_v22 = vsel %vm272_vm1, %v271_v9, %v269_v13 }
 0x119   :  { %v276_v14 = vsel %vm272_vm1, %v275_v4, %v274_v8  ;;  %v279_v24 = vsel %vm272_vm1, %v278_v10, %v277_v16  ;;  %v1000_v10 = vmov 0  }
 0x11a   :  { %v296_v25 = vsel %vm295_vm2, %v276_v14, %v273_v22  ;;  %861 = vset.pattern.permute.xlu1 %v1000_v10  ;;  %860 = vset.pattern.permute.xlu0 %v1000_v10 }
 0x11b   :  { %v298_v39 = vsel %vm297_vm3, %v279_v24, %v296_v25  ;;  %859 = vset.pattern.permute.xlu2 %v1000_v10 }
 0x11c   :  { %v1195_v60 = vpop.xlane.xlu0 %231 }
 0x11d   :  { %v280_v23 = vperm.slane %v1195_v60, %v1201_v0 }
 0x11e   :  { %v1197_v61 = vpop.xlane.xlu2 %235  ;;  %v1199_v62 = vpop.xlane.xlu1 %233 }
 0x11f   :  { %v281_v15 = vperm.slane %v1199_v62, %v1206_v2  ;;  %v283_v26 = vperm.slane %v1197_v61, %v1201_v0 }
 0x121   :  { %v282_v31 = vsel %vm272_vm1, %v281_v15, %v280_v23 }
 0x122   :  { %v300_v40 = vsel %vm299_vm4, %v282_v31, %v298_v39 }
 0x124   :  { %v1203_v1 = vpop.xlane.xlu0 %237 }
 0x125   :  { %v284_v17 = vperm.slane %v1203_v1, %v1206_v2 }
 0x126   :  { %v1208_v3 = vpop.xlane.xlu1 %239  ;;  %v1212_v6 = vpop.xlane.xlu2 %241 }
 0x127   :  { %v287_v32 = vperm.slane %v1212_v6, %v1206_v2  ;;  %v286_v33 = vperm.slane %v1208_v3, %v1201_v0  ;;  %v285_v34 = vsel %vm272_vm1, %v284_v17, %v283_v26 }
 0x128   :  { %v302_v44 = vsel %vm301_vm5, %v285_v34, %v300_v40 }
 0x129   :  { %v288_v43 = vsel %vm272_vm1, %v287_v32, %v286_v33 }
 0x12a   :  { %v304_v53 = vsel %vm303_vm6, %v288_v43, %v302_v44 }
 0x12c   :  { %v1229_v21 = vpop.xlane.xlu0 %243 }
 0x12d   :  { %v289_v41 = vperm.slane %v1229_v21, %v1201_v0 }
 0x12e   :  { %v1238_v28 = vpop.xlane.xlu1 %245  ;;  %v1252_v42 = vpop.xlane.xlu2 %247 }
 0x12f   :  { %v290_v36 = vperm.slane %v1238_v28, %v1206_v2  ;;  %v292_v50 = vperm.slane %v1252_v42, %v1201_v0 }
 0x131   :  { %v291_v49 = vsel %vm272_vm1, %v290_v36, %v289_v41 }
 0x132   :  { %v306_v4 = vsel %vm305_vm7, %v291_v49, %v304_v53 }
 0x134   :  { %v1256_v46 = vpop.xlane.xlu0 %249 }
 0x135   :  { %v293_v51 = vperm.slane %v1256_v46, %v1206_v2 }
 0x137   :  { %v294_v63 = vsel %vm272_vm1, %v293_v51, %v292_v50 }
 0x138   :  { %v308_v8 = vsel %vm307_vm8, %v294_v63, %v306_v4 }
 0x139   :  { %v311_v9 = vsel %vm310_vm9, %v308_v8, -inf }
 0x13a   :  { %312 = vmax.xlane.f32.xlu1 %v311_v9 }
 0x1ad   :  { %v1268_v13 = vpop.xlane.xlu1 %312 }
 0x1ae   :  { %v316_v14 = vperm.slane %v1268_v13, 1  ;;  %v315_v15 = vperm.slane %v1268_v13, 0  ;;  %v317_v23 = vperm.slane %v1268_v13, 2  ;;  %v319_v24 = vperm.slane %v1268_v13, 4 }
 0x1af   :  { %v320_v36 = vperm.slane %v1268_v13, 5  ;;  %v322_v50 = vperm.slane %v1268_v13, 7  ;;  %v321_v9 = vperm.slane %v1268_v13, 6 }
 0x1b0   :  { %v333_v16 = vsub.f32 %v1187_v56, %v316_v14  ;;  %v332_v17 = vsub.f32 %v1189_v57, %v315_v15  ;;  %v331_v22 = vsub.f32 %v1183_v54, %v315_v15  ;;  %v336_v32 = vsub.f32 %v1191_v58, %v317_v23 }
 0x1b1   :  { %v339_v33 = vsub.f32 %v1197_v61, %v319_v24  ;;  %v334_v56 = vsub.f32 %v1193_v59, %v316_v14  ;;  %v318_v57 = vperm.slane %v1268_v13, 3  ;;  %v342_v61 = vsub.f32 %v1212_v6, %v320_v36 }
 0x1b2   :  { %v351_v25 = vmul.f32 1.442695, %v333_v16  ;;  %v349_v26 = vmul.f32 1.442695, %v332_v17  ;;  %v347_v31 = vmul.f32 1.442695, %v331_v22  ;;  %v335_v43 = vsub.f32 %v1185_v55, %v317_v23 }
 0x1b3   :  { %v357_v34 = vmul.f32 1.442695, %v336_v32  ;;  %v363_v54 = vmul.f32 1.442695, %v339_v33  ;;  %v353_v40 = vmul.f32 1.442695, %v334_v56  ;;  %v338_v59 = vsub.f32 %v1199_v62, %v318_v57 }
 0x1b4   :  { %864 = vpow2.f32 %v351_v25  ;;  %v369_v49 = vmul.f32 1.442695, %v342_v61  ;;  %v355_v53 = vmul.f32 1.442695, %v335_v43  ;;  %v341_v6 = vsub.f32 %v1208_v3, %v320_v36 }
 0x1b5   :  { %866 = vpow2.f32 %v349_v26  ;;  %v361_v44 = vmul.f32 1.442695, %v338_v59  ;;  %v345_v55 = vsub.f32 %v1252_v42, %v322_v50  ;;  %v337_v4 = vsub.f32 %v1195_v60, %v318_v57 }
 0x1b6   :  { %868 = vpow2.f32 %v347_v31  ;;  %v367_v8 = vmul.f32 1.442695, %v341_v6  ;;  %v344_v42 = vsub.f32 %v1238_v28, %v321_v9  ;;  %v340_v60 = vsub.f32 %v1203_v1, %v319_v24 }
 0x1b7   :  { %870 = vpow2.f32 %v357_v34  ;;  %v375_v10 = vmul.f32 1.442695, %v345_v55  ;;  %v359_v15 = vmul.f32 1.442695, %v337_v4  ;;  %v343_v28 = vsub.f32 %v1229_v21, %v321_v9 }
 0x1b8   :  { %872 = vpow2.f32 %v363_v54  ;;  %v373_v13 = vmul.f32 1.442695, %v344_v42  ;;  %v365_v22 = vmul.f32 1.442695, %v340_v60  ;;  %v346_v31 = vsub.f32 %v1256_v46, %v322_v50 }
 0x1b9   :  { %874 = vpow2.f32 %v353_v40  ;;  %v371_v1 = vmul.f32 1.442695, %v343_v28 }
 0x1ba   :  { %v1282_v39 = vpop.eup %864  ;;  %876 = vpow2.f32 %v361_v44  ;;  %v377_v32 = vmul.f32 1.442695, %v346_v31 }
 0x1bb   :  { %v1284_v41 = vpop.eup %866  ;;  %402 = vperm.xlu1 %861, %v1282_v39   ;;  %878 = vpow2.f32 %v369_v49 }
 0x1bc   :  { %v1287_v58 = vpop.eup %868  ;;  %399 = vperm.xlu0 %860, %v1284_v41   ;;  %880 = vpow2.f32 %v355_v53 }
 0x1bd   :  { %396 = vperm.xlu2 %859, %v1287_v58   ;;  %v1295_v51 = vpop.eup %870  ;;  %882 = vpow2.f32 %v367_v8 }
 0x1be   :  { %v1297_v63 = vpop.eup %872  ;;  %884 = vpow2.f32 %v375_v10 }
 0x1bf   :  { %v1300_v62 = vpop.eup %874  ;;  %886 = vpow2.f32 %v359_v15 }
 0x1c0   :  { %v1308_v14 = vpop.eup %876  ;;  %888 = vpow2.f32 %v373_v13 }
 0x1c1   :  { %v1310_v16 = vpop.eup %878  ;;  %890 = vpow2.f32 %v365_v22 }
 0x1c2   :  { %v1313_v3 = vpop.eup %880  ;;  %892 = vpow2.f32 %v371_v1 }
 0x1c3   :  { %411 = vperm.xlu1 %861, %v1295_v51   ;;  %v1319_v17 = vpop.eup %882  ;;  %894 = vpow2.f32 %v377_v32 }
 0x1c4   :  { %420 = vperm.xlu0 %860, %v1297_v63   ;;  %v1321_v23 = vpop.eup %884 }
 0x1c5   :  { %405 = vperm.xlu2 %859, %v1300_v62   ;;  %v1324_v25 = vpop.eup %886 }
 0x1c6   :  { %v1329_v26 = vpop.eup %888 }
 0x1c7   :  { %v1332_v24 = vpop.eup %890 }
 0x1c8   :  { %v1336_v33 = vpop.eup %892 }
 0x1c9   :  { %v1339_v56 = vpop.eup %894 }
 0x1cb   :  { %417 = vperm.xlu1 %861, %v1308_v14  }
 0x1cc   :  { %429 = vperm.xlu0 %860, %v1310_v16  }
 0x1cd   :  { %408 = vperm.xlu2 %859, %v1313_v3  }
 0x1d3   :  { %426 = vperm.xlu1 %861, %v1319_v17  }
 0x1d4   :  { %438 = vperm.xlu0 %860, %v1321_v23  }
 0x1d5   :  { %414 = vperm.xlu2 %859, %v1324_v25  }
 0x1db   :  { %435 = vperm.xlu1 %861, %v1329_v26  }
 0x1dd   :  { %423 = vperm.xlu2 %859, %v1332_v24  }
 0x1e5   :  { %432 = vperm.xlu2 %859, %v1336_v33  }
 0x1ed   :  { %441 = vperm.xlu2 %859, %v1339_v56  }
 0x217   :  { %v397_v21 = vpop.permute.xlu2 %396 }
 0x218   :  { %v443_v55 = vperm.slane %v397_v21, %v1201_v0 }
 0x21f   :  { %v406_v34 = vpop.permute.xlu2 %405 }
 0x220   :  { %v447_v4 = vperm.slane %v406_v34, %v1206_v2 }
 0x227   :  { %v409_v57 = vpop.permute.xlu2 %408 }
 0x228   :  { %v449_v10 = vperm.slane %v409_v57, %v1201_v0 }
 0x22d   :  { %v403_v54 = vpop.permute.xlu1 %402 }
 0x22e   :  { %v400_v36 = vpop.permute.xlu0 %399  ;;  %v446_v50 = vperm.slane %v403_v54, %v1201_v0 }
 0x22f   :  { %v415_v40 = vpop.permute.xlu2 %414  ;;  %v444_v53 = vperm.slane %v400_v36, %v1206_v2 }
 0x230   :  { %v448_v15 = vsel %vm272_vm1, %v447_v4, %v446_v50  ;;  %v452_v60 = vperm.slane %v415_v40, %v1201_v0 }
 0x231   :  { %v445_v42 = vsel %vm272_vm1, %v444_v53, %v443_v55 }
 0x232   :  { %v467_v1 = vsel %vm295_vm2, %v448_v15, %v445_v42 }
 0x235   :  { %v412_v59 = vpop.permute.xlu1 %411 }
 0x236   :  { %v421_v61 = vpop.permute.xlu0 %420  ;;  %v450_v6 = vperm.slane %v412_v59, %v1206_v2 }
 0x237   :  { %v424_v43 = vpop.permute.xlu2 %423  ;;  %v455_v31 = vperm.slane %v421_v61, %v1201_v0 }
 0x238   :  { %v451_v13 = vsel %vm272_vm1, %v450_v6, %v449_v10  ;;  %v456_v32 = vperm.slane %v424_v43, %v1206_v2 }
 0x239   :  { %v468_v57 = vsel %vm297_vm3, %v451_v13, %v467_v1 }
 0x23a   :  { %v457_v53 = vsel %vm272_vm1, %v456_v32, %v455_v31 }
 0x23d   :  { %v418_v46 = vpop.permute.xlu1 %417 }
 0x23e   :  { %v430_v44 = vpop.permute.xlu0 %429  ;;  %v453_v8 = vperm.slane %v418_v46, %v1206_v2 }
 0x23f   :  { %v433_v49 = vpop.permute.xlu2 %432  ;;  %v459_v54 = vperm.slane %v430_v44, %v1206_v2 }
 0x240   :  { %v454_v22 = vsel %vm272_vm1, %v453_v8, %v452_v60  ;;  %v461_v61 = vperm.slane %v433_v49, %v1201_v0 }
 0x241   :  { %v469_v36 = vsel %vm299_vm4, %v454_v22, %v468_v57 }
 0x242   :  { %v470_v6 = vsel %vm301_vm5, %v457_v53, %v469_v36  ;;  %v679_v53 = vld [vmem:[%s1520_s5 + $0x70] sm:$0xff] }
 0x245   :  { %v427_v9 = vpop.permute.xlu1 %426 }
 0x246   :  { %v458_v28 = vperm.slane %v427_v9, %v1201_v0  ;;  %v439_v21 = vpop.permute.xlu0 %438 }
 0x247   :  { %v442_v34 = vpop.permute.xlu2 %441  ;;  %v464_v59 = vperm.slane %v439_v21, %v1201_v0 }
 0x248   :  { %v460_v40 = vsel %vm272_vm1, %v459_v54, %v458_v28  ;;  %v465_v46 = vperm.slane %v442_v34, %v1206_v2 }
 0x249   :  { %v471_v44 = vsel %vm303_vm6, %v460_v40, %v470_v6  ;;  %v678_v6 = vld [vmem:[%s1520_s5 + $0x68] sm:$0xff] }
 0x24a   :  { %v466_v4 = vsel %vm272_vm1, %v465_v46, %v464_v59 }
 0x24d   :  { %v436_v50 = vpop.permute.xlu1 %435 }
 0x24e   :  { %v462_v43 = vperm.slane %v436_v50, %v1206_v2  ;;  %v680_v50 = vld [vmem:[%s1520_s5 + $0x78] sm:$0xff] }
 0x24f   :  { %697 = vmatpush.msra.mxu2 %v680_v50 }
 0x250   :  { %v463_v55 = vsel %vm272_vm1, %v462_v43, %v461_v61 }
 0x251   :  { %v472_v8 = vsel %vm305_vm7, %v463_v55, %v471_v44  ;;  %698 = vmatpush.msra.mxu2 %v679_v53  ;;  %v677_v55 = vld [vmem:[%s1520_s5 + $0x60] sm:$0xff]  ;;  %v676_v44 = vld [vmem:[%s1520_s5 + $0x58] sm:$0xff] }
 0x252   :  { %v473_v9 = vsel %vm307_vm8, %v466_v4, %v472_v8  ;;  %v675_v4 = vld [vmem:[%s1520_s5 + $0x50] sm:$0xff] }
 0x253   :  { %v475_v10 = vsel %vm310_vm9, %v473_v9, 0.0  ;;  %699 = vmatpush.msra.mxu2 %v678_v6  ;;  %v674_v9 = vld [vmem:[%s1520_s5 + $0x48] sm:$0xff] }
 0x254   :  { %476 = vadd.xlane.f32.xlu1 %v475_v10 }
 0x255   :  { %700 = vmatpush.msra.mxu2 %v677_v55 }
 0x257   :  { %701 = vmatpush.msra.mxu2 %v676_v44 }
 0x259   :  { %702 = vmatpush.msra.mxu2 %v675_v4 }
 0x25b   :  { %703 = vmatpush.msra.mxu2 %v674_v9 }
 0x2c7   :  { %v477_v15 = vpop.xlane.xlu1 %476 }
 0x2c8   :  { %896 = vrcp.f32 %v477_v15 }
 0x2ce   :  { %v897_v0 = vpop.eup %896 }
 0x2cf   :  { %v485_v49 = vperm.slane %v897_v0, 5  ;;  %v480_v2 = vperm.slane %v897_v0, 0  ;;  %v481_v22 = vperm.slane %v897_v0, 1  ;;  %v482_v31 = vperm.slane %v897_v0, 2 }
 0x2d0   :  { %v484_v34 = vperm.slane %v897_v0, 4  ;;  %v486_v57 = vperm.slane %v897_v0, 6  ;;  %v487_v54 = vperm.slane %v897_v0, 7 }
 0x2d1   :  { %v506_v42 = vmul.f32 %v1319_v17, %v485_v49  ;;  %v497_v60 = vmul.f32 %v1284_v41, %v480_v2  ;;  %v496_v13 = vmul.f32 %v1287_v58, %v480_v2  ;;  %v499_v28 = vmul.f32 %v1300_v62, %v481_v22 }
 0x2d2   :  { %v498_v1 = vmul.f32 %v1282_v39, %v481_v22  ;;  %v501_v32 = vmul.f32 %v1295_v51, %v482_v31  ;;  %v500_v21 = vmul.f32 %v1313_v3, %v482_v31  ;;  %v483_v41 = vperm.slane %v897_v0, 3  ;;  %v673_v0 = vld [vmem:[%s1520_s5 + $0x40] sm:$0xff] }
 0x2d3   :  { %564 = vperm.xlu1 %861, %v506_v42   ;;  %519 = vperm.xlu2 %859, %v497_v60   ;;  %v505_v62 = vmul.f32 %v1332_v24, %v484_v34  ;;  %v504_v39 = vmul.f32 %v1297_v63, %v484_v34  ;;  %v508_v51 = vmul.f32 %v1336_v33, %v486_v57  ;;  %v113_v63 = vld [vmem:[%s1519_s4 + $0x38] sm:$0xff] }
 0x2d4   :  { %514 = vperm.xlu0 %860, %v496_v13   ;;  %v503_v58 = vmul.f32 %v1308_v14, %v483_v41  ;;  %v502_v17 = vmul.f32 %v1324_v25, %v483_v41  ;;  %v507_v3 = vmul.f32 %v1310_v16, %v485_v49  ;;  %v510_v14 = vmul.f32 %v1321_v23, %v487_v54  ;;  %v111_v16 = vld [vmem:[%s1519_s4 + $0x28] sm:$0xff]  ;;  %v109_v23 = vld [vmem:[%s1519_s4 + $0x18] sm:$0xff] }
 0x2d5   :  { %v509_v25 = vmul.f32 %v1329_v26, %v486_v57  ;;  %v511_v24 = vmul.f32 %v1339_v56, %v487_v54  ;;  %150 = vmatpush.msra.mxu1 %v113_v63  ;;  %v107_v26 = vld [vmem:[%s1519_s4 + $0x8] sm:$0xff]  ;;  %v672_v13 = vld [vmem:[%s1520_s5 + $0x38] sm:$0xff]  ;;  %704 = vmatpush.msra.mxu2 %v673_v0  ;;  %v667_v54 = vld [vmem:[%s1520_s5 + $0x10] sm:$0xff] }
 0x2d7   :  { %151 = vmatpush.msra.mxu1 %v111_v16  ;;  %705 = vmatpush.msra.mxu2 %v672_v13 }
 0x2d9   :  { %152 = vmatpush.msra.mxu1 %v109_v23 }
 0x2db   :  { %529 = vperm.xlu2 %859, %v499_v28   ;;  %153 = vmatpush.msra.mxu1 %v107_v26  ;;  %v666_v26 = vld [vmem:[%s1520_s5 + $0x8] sm:$0xff] }
 0x2dc   :  { %524 = vperm.xlu0 %860, %v498_v1   ;;  %846 = vmatmul.msk.f32.vlgmr.msra.gmra.mxu1 %vm63_vm0, %v1083_v5 }
 0x2e3   :  { %539 = vperm.xlu2 %859, %v501_v32  }
 0x2e4   :  { %534 = vperm.xlu0 %860, %v500_v21  }
 0x2eb   :  { %549 = vperm.xlu2 %859, %v503_v58  }
 0x2ec   :  { %544 = vperm.xlu0 %860, %v502_v17  }
 0x2f3   :  { %559 = vperm.xlu2 %859, %v505_v62  }
 0x2f4   :  { %554 = vperm.xlu0 %860, %v504_v39  }
 0x2fb   :  { %574 = vperm.xlu2 %859, %v508_v51  }
 0x2fc   :  { %569 = vperm.xlu0 %860, %v507_v3  }
 0x303   :  { %584 = vperm.xlu2 %859, %v510_v14  }
 0x304   :  { %579 = vperm.xlu0 %860, %v509_v25  }
 0x30c   :  { %589 = vperm.xlu0 %860, %v511_v24  }
 0x32d   :  { %v520_v33 = vpop.permute.xlu2 %519 }
 0x32e   :  { %v593_v22 = vmul.f32 %v520_v33, %v1108_v18 }
 0x335   :  { %v530_v36 = vpop.permute.xlu2 %529 }
 0x336   :  { %v595_v42 = vmul.f32 %v530_v36, %v1118_v20  ;;  %v671_v20 = vld [vmem:[%s1520_s5 + $0x30] sm:$0xff] }
 0x337   :  { %706 = vmatpush.msra.mxu2 %v671_v20 }
 0x33d   :  { %v540_v59 = vpop.permute.xlu2 %539 }
 0x345   :  { %v550_v61 = vpop.permute.xlu2 %549  ;;  %v565_v28 = vpop.permute.xlu1 %564 }
 0x346   :  { %v515_v56 = vpop.permute.xlu0 %514  ;;  %v602_v18 = vmul.f32 %v565_v28, %v1154_v38 }
 0x347   :  { %v592_v49 = vmul.f32 %v515_v56, %v1090_v7  ;;  %v599_v7 = vmul.f32 %v550_v61, %v1136_v30 }
 0x34d   :  { %v560_v10 = vpop.permute.xlu2 %559 }
 0x34e   :  { %v525_v40 = vpop.permute.xlu0 %524  ;;  %v601_v31 = vmul.f32 %v560_v10, %v1144_v35  ;;  %v669_v35 = vld [vmem:[%s1520_s5 + $0x20] sm:$0xff] }
 0x34f   :  { %v594_v15 = vmul.f32 %v525_v40, %v1100_v12  ;;  %v597_v12 = vmul.f32 %v540_v59, %v1113_v19  ;;  %v665_v59 = vld [vmem:[%s1520_s5] sm:$0xff] }
 0x355   :  { %v575_v62 = vpop.permute.xlu2 %574 }
 0x356   :  { %v535_v46 = vpop.permute.xlu0 %534  ;;  %v604_v63 = vmul.f32 %v575_v62, %v1162_v45 }
 0x357   :  { %v596_v2 = vmul.f32 %v535_v46, %v1095_v11  ;;  %v615_v11 = vadd.f32 %v595_v42, %v594_v15 }
 0x359   :  { %v622_v32 = vadd.f32 %v597_v12, %v596_v2  ;;  %v616_v58 = vrot.slane %v615_v11, 4 }
 0x35b   :  { %v623_v39 = vrot.slane %v622_v32, 4  ;;  %v617_v51 = vadd.f32 %v616_v58, %v615_v11 }
 0x35d   :  { %v624_v25 = vadd.f32 %v623_v39, %v622_v32  ;;  %v618_v56 = vrot.slane %v617_v51, 2  ;;  %v585_v61 = vpop.permute.xlu2 %584 }
 0x35e   :  { %v545_v43 = vpop.permute.xlu0 %544  ;;  %v606_v9 = vmul.f32 %v585_v61, %v1167_v47 }
 0x35f   :  { %v598_v60 = vmul.f32 %v545_v43, %v1126_v27  ;;  %v608_v27 = vadd.f32 %v593_v22, %v592_v49  ;;  %v625_v50 = vrot.slane %v624_v25, 2  ;;  %v619_v43 = vadd.f32 %v618_v56, %v617_v51  ;;  %v73_v51 = vld [vmem:[%s72_s21] sm:$0x1]  ;;  %s815_s21 = sshll.u32 %s1525_s10, 4  ;;  %s816_s21 = int_to_ptr.hbm [resolvable:$true] %s815_s21 }
 0x360   :  { %74 = vst [vmem:[#allocation3 + $0x1] sm:$0x1] %v73_v51 }
 0x361   :  { %v629_v19 = vadd.f32 %v599_v7, %v598_v60  ;;  %v609_v34 = vrot.slane %v608_v27, 4  ;;  %v626_v4 = vadd.f32 %v625_v50, %v624_v25  ;;  %v620_v2 = vrot.slane %v619_v43, 1  ;;  %v93_v25 = vld [vmem:[%s92_s30] sm:$0x1] }
 0x362   :  { %94 = vst [vmem:[#allocation3 + $0x5] sm:$0x1] %v93_v25 }
 0x363   :  { %v630_v38 = vrot.slane %v629_v19, 4  ;;  %v610_v14 = vadd.f32 %v609_v34, %v608_v27  ;;  %v627_v13 = vrot.slane %v626_v4, 1  ;;  %v621_v11 = vadd.f32 %v620_v2, %v619_v43  ;;  %v768_v2 = vld [vmem:[#allocation6 + $0x10] sm:$0xff] }
 0x365   :  { %v631_v16 = vadd.f32 %v630_v38, %v629_v19  ;;  %v611_v46 = vrot.slane %v610_v14, 2 }
 0x366   :  { %v555_v8 = vpop.permute.xlu0 %554 }
 0x367   :  { %v600_v1 = vmul.f32 %v555_v8, %v1131_v29  ;;  %v670_v29 = vld [vmem:[%s1520_s5 + $0x28] sm:$0xff]  ;;  %v632_v45 = vrot.slane %v631_v16, 2  ;;  %v612_v44 = vadd.f32 %v611_v46, %v610_v14  ;;  %v88_v14 = vld [vmem:[%s87_s28] sm:$0x1] }
 0x368   :  { %707 = vmatpush.msra.mxu2 %v670_v29  ;;  %89 = vst [vmem:[#allocation3 + $0x4] sm:$0x1] %v88_v14 }
 0x369   :  { %v636_v30 = vadd.f32 %v601_v31, %v600_v1  ;;  %v633_v10 = vadd.f32 %v632_v45, %v631_v16  ;;  %v613_v12 = vrot.slane %v612_v44, 1  ;;  %v628_v31 = vadd.f32 %v627_v13, %v626_v4  ;;  %v862_v16 = vld [vmem:[%s1521_s6] ss:$0 sm:$0xff]  ;;  %s1004_s6 = smov [#allocation10]  }
 0x36a   :  { %708 = vmatpush.msra.mxu2 %v669_v35  ;;  %s813_s16 = sshll.u32 %s1004_s6, 4  ;;  %s814_s16 = int_to_ptr.vmem [resolvable:$true] %s813_s16 }
 0x36b   :  { %v637_v57 = vrot.slane %v636_v30, 4  ;;  %v634_v28 = vrot.slane %v633_v10, 1  ;;  %v614_v47 = vadd.f32 %v613_v12, %v612_v44 }
 0x36d   :  { %v638_v33 = vadd.f32 %v637_v57, %v636_v30 }
 0x36e   :  { %v570_v21 = vpop.permute.xlu0 %569 }
 0x36f   :  { %v603_v41 = vmul.f32 %v570_v21, %v1149_v37  ;;  %v668_v37 = vld [vmem:[%s1520_s5 + $0x18] sm:$0xff]  ;;  %v635_v21 = vadd.f32 %v634_v28, %v633_v10  ;;  %s66_s5 = sld [smem:[#allocation5]] }
 0x370   :  { %709 = vmatpush.msra.mxu2 %v668_v37 }
 0x371   :  { %v643_v17 = vadd.f32 %v603_v41, %v602_v18 }
 0x372   :  { %710 = vmatpush.msra.mxu2 %v667_v54  ;;  %v83_v54 = vld [vmem:[%s82_s26] sm:$0x1] }
 0x373   :  { %v644_v3 = vrot.slane %v643_v17, 4  ;;  %84 = vst [vmem:[#allocation3 + $0x3] sm:$0x1] %v83_v54 }
 0x374   :  { %711 = vmatpush.msra.mxu2 %v666_v26 }
 0x375   :  { %v645_v36 = vadd.f32 %v644_v3, %v643_v17  ;;  %s67_s19 = scalar_lea.vmem %s1516_s1, %s66_s5  ;;  %v78_v3 = vld [vmem:[%s77_s0] sm:$0x1]  ;;  %s1003_s1 = smov 96  }
 0x376   :  { %v580_v24 = vpop.permute.xlu0 %579  ;;  %712 = vmatpush.msra.mxu2 %v665_v59  ;;  %v68_v57 = vld [vmem:[%s67_s19] sm:$0x1]  ;;  %79 = vst [vmem:[#allocation3 + $0x2] sm:$0x1] %v78_v3  ;;  %s1002_s19 = smov 32   ;;  %s1005_s0 = smov [#allocation9]  }
 0x377   :  { %v605_v23 = vmul.f32 %v580_v24, %v1172_v48  ;;  %v639_v48 = vrot.slane %v638_v33, 2  ;;  %v646_v6 = vrot.slane %v645_v36, 2  ;;  %69 = vst [vmem:[#allocation3] sm:$0x1] %v68_v57  ;;  %v98_v24 = vld [vmem:[%s97_s2] sm:$0x1] }
 0x378   :  { %99 = vst [vmem:[#allocation3 + $0x6] sm:$0x1] %v98_v24  ;;  %s802_s24 = sshll.u32 %s1005_s0, 4  ;;  %s803_s24 = int_to_ptr.vmem [resolvable:$true] %s802_s24 }
 0x379   :  { %v650_v40 = vadd.f32 %v605_v23, %v604_v63  ;;  %v640_v49 = vadd.f32 %v639_v48, %v638_v33  ;;  %v647_v42 = vadd.f32 %v646_v6, %v645_v36  ;;  %v103_v63 = vld [vmem:[%s102_s18] sm:$0x1]  ;;  %v155_v23 = vpop.f32.mrf.mxu1 }
 0x37a   :  { %104 = vst [vmem:[#allocation3 + $0x7] sm:$0x1] %v103_v63  ;;  %v162_v26 = vadd.f32 %v862_v16, %v155_v23 }
 0x37b   :  { %v651_v53 = vrot.slane %v650_v40, 4  ;;  %v641_v7 = vrot.slane %v640_v49, 1  ;;  %v648_v20 = vrot.slane %v647_v42, 1 }
 0x37c   :  { %739 = vrot.lane.b32.xlu2 %v162_v26, %s1001_s15 }
 0x37d   :  { %v652_v55 = vadd.f32 %v651_v53, %v650_v40  ;;  %v642_v19 = vadd.f32 %v641_v7, %v640_v49  ;;  %v649_v41 = vadd.f32 %v648_v20, %v647_v42  ;;  %v769_v49 = vld [vmem:[#allocation6 + $0x18] sm:$0xff]  ;;  %v767_v42 = vld [vmem:[#allocation6 + $0x8] sm:$0xff]  ;;  %v863_v20 = vld [vmem:[%s1523_s8] ss:$0 sm:$0xff] }
 0x37e   :  { %v590_v8 = vpop.permute.xlu0 %589  ;;  %788 = vmatpush.msra.mxu3 %v769_v49 }
 0x37f   :  { %v653_v15 = vrot.slane %v652_v55, 2  ;;  %v607_v0 = vmul.f32 %v590_v8, %v1180_v52  ;;  %v689_v52 = vsel %vm295_vm2, %v621_v11, %v614_v47 }
 0x380   :  { %v690_v58 = vsel %vm297_vm3, %v628_v31, %v689_v52  ;;  %789 = vmatpush.msra.mxu3 %v768_v2 }
 0x381   :  { %v657_v60 = vadd.f32 %v607_v0, %v606_v9  ;;  %v654_v22 = vadd.f32 %v653_v15, %v652_v55  ;;  %v691_v35 = vsel %vm299_vm4, %v635_v21, %v690_v58  ;;  %v664_v33 = vld [vmem:[#allocation3] sm:$0xff] }
 0x382   :  { %v692_v34 = vsel %vm301_vm5, %v642_v19, %v691_v35  ;;  %790 = vmatpush.msra.mxu3 %v767_v42 }
 0x383   :  { %v658_v1 = vrot.slane %v657_v60, 4  ;;  %v655_v32 = vrot.slane %v654_v22, 1  ;;  %v693_v39 = vsel %vm303_vm6, %v649_v41, %v692_v34 }
 0x384   :  { %755 = vrot.lane.b32.xlu2 %v1083_v5, %s1002_s19 }
 0x385   :  { %v659_v27 = vadd.f32 %v658_v1, %v657_v60  ;;  %v656_v30 = vadd.f32 %v655_v32, %v654_v22  ;;  %v766_v60 = vld [vmem:[#allocation6] sm:$0xff] }
 0x386   :  { %791 = vmatpush.msra.mxu3 %v766_v60 }
 0x387   :  { %v660_v18 = vrot.slane %v659_v27, 2  ;;  %v694_v38 = vsel %vm305_vm7, %v656_v30, %v693_v39 }
 0x389   :  { %v661_v29 = vadd.f32 %v660_v18, %v659_v27 }
 0x38b   :  { %v662_v17 = vrot.slane %v661_v29, 1 }
 0x38d   :  { %v663_v62 = vadd.f32 %v662_v17, %v661_v29 }
 0x38f   :  { %v695_v37 = vsel %vm307_vm8, %v663_v62, %v694_v38 }
 0x390   :  { %713 = vmatmul.f32.vlgmr.msra.gmra.mxu2 %v695_v37 }
 0x3d6   :  { %v740_v4 = vpop.permute.xlu2 %739 }
 0x3de   :  { %v756_v13 = vpop.permute.xlu2 %755 }
 0x413   :  { %v714_v56 = vpop.f32.mrf.mxu2 }
 0x414   :  { %v717_v36 = vadd.f32 %v714_v56, %v664_v33 }
 0x416   :  { %v718_v40 = vadd.f32 %v717_v36, %v162_v26 }
 0x418   :  { %v847_v59 = vmul.f32 -1.442695, %v718_v40 }
 0x41a   :  { %898 = vpow2.f32 %v847_v59 }
 0x420   :  { %v899_v46 = vpop.eup %898 }
 0x421   :  { %v722_v50 = vadd.f32 1.0, %v899_v46 }
 0x423   :  { %900 = vrcp.f32 %v722_v50  ;;  %v734_v48 = vand.u32 2147483648, %v722_v50  ;;  %v732_v6 = vand.u32 2147483647, %v722_v50  ;;  %vm728_vm11 = vweird.f32 %v722_v50 }
 0x425   :  { %v735_v5 = vor.u32 1.1754944e-38, %v734_v48  ;;  %vm733_vm13 = vcmp.eq.f32.partialorder %v732_v6, 8.507059e+37 }
 0x429   :  { %v901_v45 = vpop.eup %900 }
 0x42a   :  { %v724_v53 = vmul.f32 %v901_v45, %v722_v50  ;;  %vm729_vm10 = vweird.f32 %v901_v45 }
 0x42b   :  { %vm730_vm12 = vmor %vm728_vm11, %vm729_vm10 }
 0x42c   :  { %v725_v61 = vsub.f32 1.0, %v724_v53 }
 0x42e   :  { %v726_v43 = vmul.f32 %v901_v45, %v725_v61 }
 0x430   :  { %v727_v55 = vadd.f32 %v901_v45, %v726_v43 }
 0x432   :  { %v731_v44 = vsel %vm730_vm12, %v901_v45, %v727_v55 }
 0x433   :  { %v736_v8 = vsel %vm733_vm13, %v735_v5, %v731_v44 }
 0x434   :  { %v742_v9 = vmul.f32 %v740_v4, %v736_v8  ;;  %v749_v22 = vsub.f32 1.0, %v736_v8  ;;  %v758_v28 = vmul.f32 %v756_v13, %v736_v8 }
 0x436   :  { %744 = vrot.lane.b32.xlu1 %v742_v9, %s1001_s15 }
 0x4a8   :  { %v745_v10 = vpop.permute.xlu1 %744 }
 0x4a9   :  { %v747_v15 = vadd.f32 %v745_v10, %v717_v36 }
 0x4ab   :  { %902 = vtanh.f32 %v747_v15 }
 0x4b1   :  { %v903_v0 = vpop.eup %902 }
 0x4b2   :  { %751 = vrot.lane.b32.xlu0 %v903_v0, %s1003_s1 }
 0x524   :  { %v752_v12 = vpop.permute.xlu0 %751 }
 0x525   :  { %v754_v1 = vmul.f32 %v752_v12, %v749_v22 }
 0x527   :  { %v759_v7 = vadd.f32 %v758_v28, %v754_v1 }
 0x529   :  { %761 = vrot.lane.b32.xlu1 %v759_v7, %s1003_s1 }
 0x59b   :  { %v762_v11 = vpop.permute.xlu1 %761 }
 0x59c   :  { %764 = vst.msk [vmem:[#allocation2] sm:$0xff] %vm63_vm0, %v762_v11  ;;  %848 = vmatmul.msk.f32.vlgmr.msra.gmra.mxu3 %vm63_vm0, %v762_v11 }
 0x59d   :  { %765 = vst.msk [vmem:[#allocation10] sm:$0xff] %vm63_vm0, %v762_v11 }
 0x59e   :  { %818 = dma.vmem_to_hbm [thread:$0]  %s814_s16, 128, %s816_s21, [#allocation11]  }
 0x61f   :  { %v793_v27 = vpop.f32.mrf.mxu3 }
 0x620   :  { %v794_v31 = vadd.f32 %v863_v20, %v793_v27 }
 0x622   :  { %796 = vst [vmem:[#allocation9] sm:$0xff] %v794_v31 }
 0x623   :  { %807 = dma.vmem_to_hbm [thread:$0]  %s803_s24, 128, %s805_s7, [#allocation8]  }
 0x624   :  { %992 = dma.done.wait [#allocation8], 128  }
 0x625   :  { %993 = vsyncadd [#allocation8], 4294967168 }
 0x626   :  { %994 = dma.done.wait [#allocation11], 128  }
 0x627   :  { %995 = vsyncadd [#allocation11], 4294967168 }
 0x628   :  { %827 = vsyncpa [#allocation7], 1 }
 0x629   :  { %828 = vsyncpa [#allocation8], 1 }
 0x62a   :  { %829 = vsyncpa [#allocation11], 1 }

</bundles_post_ra>
